<compile_context>
chip_gen: v5e
topology: v5e:2x2
jax: 0.10.0
libtpu: 0.0.40
codegen_flags: <defaults>
</compile_context>

<pallas_src>
import math
import functools

import jax
import jax.numpy as jnp
from jax import lax
from jax.experimental import pallas as pl
from jax.experimental.pallas import tpu as pltpu

_MATMUL_DTYPE = jnp.bfloat16          # MXU-native input dtype (f32 accumulate)
_VMEM_LIMIT = 48 * 1024 * 1024        # safe on v5e/v6e (128 MiB) and v7x (64 MiB)


def _pick_tile(dim, preferred, granule):
    """Largest multiple of `granule` <= `preferred` that evenly divides `dim`.

    Falls back to the full dim (always a legal block shape).  Realistic GPT
    shapes (T, C multiples of 128) hit the preferred tile directly.
    """
    if dim <= preferred:
        return dim
    t = (preferred // granule) * granule
    while t >= granule:
        if dim % t == 0:
            return t
        t -= granule
    return dim


# ---------------------------------------------------------------------------
# Tiled linear kernel:  out = x @ w + b   (w already transposed to (K, N))
# ---------------------------------------------------------------------------
def _linear_kernel(x_ref, w_ref, b_ref, o_ref, acc_ref):
    @pl.when(pl.program_id(2) == 0)
    def _init():
        acc_ref[...] = jnp.zeros_like(acc_ref)

    acc_ref[...] += jnp.dot(x_ref[...], w_ref[...],
                            preferred_element_type=jnp.float32)

    @pl.when(pl.program_id(2) == pl.num_programs(2) - 1)
    def _finalize():
        o_ref[...] = (acc_ref[...] + b_ref[...].astype(jnp.float32)
                      ).astype(o_ref.dtype)


def _linear(x2d, w_t, bias, *, out_dtype):
    """x2d: (M, K), w_t: (K, N) (pre-transposed), bias: (1, N)."""
    M, K = x2d.shape
    K2, N = w_t.shape
    assert K == K2
    tm = _pick_tile(M, 256, 8)
    tn = _pick_tile(N, 256, 128)
    tk = _pick_tile(K, 512, 128)
    grid = (M // tm, N // tn, K // tk)

    return pl.pallas_call(
        _linear_kernel,
        out_shape=jax.ShapeDtypeStruct((M, N), out_dtype),
        grid_spec=pltpu.PrefetchScalarGridSpec(
            num_scalar_prefetch=0,
            grid=grid,
            in_specs=[
                pl.BlockSpec((tm, tk), lambda i, j, k: (i, k)),   # x
                pl.BlockSpec((tk, tn), lambda i, j, k: (k, j)),   # w (K, N)
                pl.BlockSpec((1, tn), lambda i, j, k: (0, j)),    # bias
            ],
            out_specs=pl.BlockSpec((tm, tn), lambda i, j, k: (i, j)),
            scratch_shapes=[pltpu.VMEM((tm, tn), jnp.float32)],
        ),
        compiler_params=pltpu.CompilerParams(
            dimension_semantics=("parallel", "parallel", "arbitrary"),
            vmem_limit_bytes=_VMEM_LIMIT),
    )(x2d, w_t, bias)


# ---------------------------------------------------------------------------
# Flash-attention kernel (causal, online softmax)
# ---------------------------------------------------------------------------
def _flash_attn_kernel(q_ref, k_ref, v_ref, o_ref, m_sc, l_sc, acc_sc,
                       *, sm_scale, block_q, block_kv):
    qi = pl.program_id(2)
    kvi = pl.program_id(3)

    @pl.when(kvi == 0)
    def _init():
        m_sc[...] = jnp.full_like(m_sc, -jnp.inf)
        l_sc[...] = jnp.zeros_like(l_sc)
        acc_sc[...] = jnp.zeros_like(acc_sc)

    # Causal block pruning: kv tiles strictly above the diagonal contribute
    # nothing -> skip both matmuls.  (The k/v index_map is clamped to
    # min(kvi, qi), so these skipped steps also issue no new DMAs.)
    @pl.when(kvi <= qi)
    def _compute():
        q = q_ref[0, 0]                         # (block_q,  D) bf16
        k = k_ref[0, 0]                         # (block_kv, D) bf16
        v = v_ref[0, 0]                         # (block_kv, D) bf16

        # s = q @ k^T ; contract on D — MXU handles the "trans_b" natively,
        # no in-kernel transpose / relayout.
        s = lax.dot_general(q, k, (((1,), (1,)), ((), ())),
                            preferred_element_type=jnp.float32) * sm_scale

        # Causal mask.  Only the diagonal tile is partially masked; for
        # kvi < qi the mask is trivially all-true (cheap VPU select, the
        # matmuls dominate), and fully-masked tiles were skipped above.
        row_ids = qi * block_q + lax.broadcasted_iota(jnp.int32, s.shape, 0)
        col_ids = kvi * block_kv + lax.broadcasted_iota(jnp.int32, s.shape, 1)
        s = jnp.where(col_ids <= row_ids, s, -jnp.inf)

        # Online softmax update (all statistics in f32).
        m_prev = m_sc[...]                                   # (block_q, 1)
        m_new = jnp.maximum(m_prev, jnp.max(s, axis=-1, keepdims=True))
        alpha = jnp.exp(m_prev - m_new)
        p = jnp.exp(s - m_new)                               # (block_q, block_kv)
        l_sc[...] = alpha * l_sc[...] + jnp.sum(p, axis=-1, keepdims=True)
        acc_sc[...] = alpha * acc_sc[...] + jnp.dot(
            p.astype(_MATMUL_DTYPE), v, preferred_element_type=jnp.float32)
        m_sc[...] = m_new

    # The diagonal tile is the last contributing kv tile for this q tile.
    @pl.when(kvi == qi)
    def _finalize():
        inv_l = pl.reciprocal(l_sc[...], approx=True)        # EUP, ~free
        o_ref[0, 0] = (acc_sc[...] * inv_l).astype(o_ref.dtype)


def _flash_attention(q, k, v, *, block_q, block_kv):
    """q, k, v: (B, H, T, D) bf16 -> (B, H, T, D) bf16."""
    B, H, T, D = q.shape
    assert block_q == block_kv and T % block_q == 0
    sm_scale = 1.0 / math.sqrt(D)
    grid = (B, H, T // block_q, T // block_kv)

    q_map = lambda b, h, qi, kvi: (b, h, qi, 0)
    # Clamp so pruned (kvi > qi) steps re-reference the diagonal block: the
    # pipeliner sees an unchanged block index and issues no DMA.
    kv_map = lambda b, h, qi, kvi: (b, h, jnp.minimum(kvi, qi), 0)
    o_map = lambda b, h, qi, kvi: (b, h, qi, 0)

    kernel = functools.partial(_flash_attn_kernel, sm_scale=sm_scale,
                               block_q=block_q, block_kv=block_kv)

    return pl.pallas_call(
        kernel,
        out_shape=jax.ShapeDtypeStruct((B, H, T, D), _MATMUL_DTYPE),
        grid_spec=pltpu.PrefetchScalarGridSpec(
            num_scalar_prefetch=0,
            grid=grid,
            in_specs=[
                pl.BlockSpec((1, 1, block_q, D), q_map),
                pl.BlockSpec((1, 1, block_kv, D), kv_map),
                pl.BlockSpec((1, 1, block_kv, D), kv_map),
            ],
            out_specs=pl.BlockSpec((1, 1, block_q, D), o_map),
            scratch_shapes=[
                pltpu.VMEM((block_q, 1), jnp.float32),   # m (running max)
                pltpu.VMEM((block_q, 1), jnp.float32),   # l (running denom)
                pltpu.VMEM((block_q, D), jnp.float32),   # acc (unnormalized o)
            ],
        ),
        compiler_params=pltpu.CompilerParams(
            dimension_semantics=("parallel", "parallel", "parallel",
                                 "arbitrary"),
            vmem_limit_bytes=_VMEM_LIMIT),
    )(q, k, v)


# ---------------------------------------------------------------------------
# Full module forward
# ---------------------------------------------------------------------------
def causal_self_attention(x, w_attn, b_attn, w_proj, b_proj, n_head,
                          *, block_q=None, block_kv=None):
    """x: (B, T, C).  Weights follow torch.nn.Linear convention (out, in).

    Assumes block_size >= T (the torch buffer mask is always lower-triangular
    over the first T positions, which the in-kernel iota mask reproduces).
    """
    B, T, C = x.shape
    H = n_head
    D = C // H
    assert C % H == 0

    bq = block_q if block_q is not None else _pick_tile(T, 128, 8)
    bkv = block_kv if block_kv is not None else bq
    assert bq == bkv, "causal block pruning assumes equal q/kv tiles"

    # Pre-transpose weights once in the wrapper (no per-step .T relayout in
    # the kernels) and cast to the MXU-native dtype.
    w_attn_t = w_attn.T.astype(_MATMUL_DTYPE)          # (C, 3C)
    w_proj_t = w_proj.T.astype(_MATMUL_DTYPE)          # (C, C)
    b_attn2 = b_attn.reshape(1, 3 * C).astype(jnp.float32)
    b_proj2 = b_proj.reshape(1, C).astype(jnp.float32)

    # 1) QKV projection (tiled Pallas matmul, f32 accumulate).
    x2d = x.reshape(B * T, C).astype(_MATMUL_DTYPE)
    qkv = _linear(x2d, w_attn_t, b_attn2, out_dtype=jnp.float32)   # (B*T, 3C)

    # 2) Head split — wrapper-side layout plumbing (outside the kernel).
    qkv = qkv.reshape(B, T, 3, H, D)
    q = qkv[:, :, 0].transpose(0, 2, 1, 3).astype(_MATMUL_DTYPE)   # (B,H,T,D)
    k = qkv[:, :, 1].transpose(0, 2, 1, 3).astype(_MATMUL_DTYPE)
    v = qkv[:, :, 2].transpose(0, 2, 1, 3).astype(_MATMUL_DTYPE)

    # 3) Causal flash attention.
    y = _flash_attention(q, k, v, block_q=bq, block_kv=bkv)        # (B,H,T,D)

    # TODO(synk): attn_dropout / resid_dropout are identity in eval mode.

    # 4) Merge heads + output projection.
    y2d = y.transpose(0, 2, 1, 3).reshape(B * T, C)
    out = _linear(y2d, w_proj_t, b_proj2, out_dtype=x.dtype)       # (B*T, C)
    return out.reshape(B, T, C)


# ---------------------------------------------------------------------------
# Pure-JAX f32 reference mirroring the PyTorch forward
# ---------------------------------------------------------------------------
def reference_jax(x, w_attn, b_attn, w_proj, b_proj, n_head):
    B, T, C = x.shape
    D = C // n_head
    qkv = jnp.einsum('btc,oc->bto', x, w_attn) + b_attn
    q, k, v = jnp.split(qkv, 3, axis=-1)
    q = q.reshape(B, T, n_head, D).transpose(0, 2, 1, 3)
    k = k.reshape(B, T, n_head, D).transpose(0, 2, 1, 3)
    v = v.reshape(B, T, n_head, D).transpose(0, 2, 1, 3)
    att = jnp.einsum('bhtd,bhsd->bhts', q, k) / math.sqrt(D)
    mask = jnp.tril(jnp.ones((T, T), bool))
    att = jnp.where(mask[None, None], att, -jnp.inf)
    att = jax.nn.softmax(att, axis=-1)
    y = jnp.einsum('bhts,bhsd->bhtd', att, v)
    y = y.transpose(0, 2, 1, 3).reshape(B, T, C)
    return jnp.einsum('btc,oc->bto', y, w_proj) + b_proj


if __name__ == "__main__":
    B, T, C, n_head = 2, 16, 32, 4      # block_size >= T assumed

    key = jax.random.PRNGKey(0)
    kx, k1, k2, k3, k4 = jax.random.split(key, 5)

    x = jax.random.normal(kx, (B, T, C), dtype=jnp.float32)
    # deterministic Linear params (torch convention: weight (out, in))
    w_attn = jax.random.normal(k1, (3 * C, C), dtype=jnp.float32) * 0.02
    b_attn = jax.random.normal(k2, (3 * C,), dtype=jnp.float32) * 0.02
    w_proj = jax.random.normal(k3, (C, C), dtype=jnp.float32) * 0.02
    b_proj = jax.random.normal(k4, (C,), dtype=jnp.float32) * 0.02

    # block_q = block_kv = 8 so the small test exercises multiple kv tiles,
    # the online-softmax accumulation, and the causal block-skipping path.
    out = causal_self_attention(x, w_attn, b_attn, w_proj, b_proj, n_head,
                                block_q=8, block_kv=8)
    out = jax.block_until_ready(out)

    ref = reference_jax(x, w_attn, b_attn, w_proj, b_proj, n_head)
    max_err = float(jnp.max(jnp.abs(out - ref)))
    # bf16 MXU inputs (f32 accumulate) vs pure-f32 reference.
    assert max_err < 2e-2, f"max err {max_err}"

    print("KERNEL_OK")
</pallas_src>

<mosaic_0001>
module attributes {stable_mosaic.version = 11 : i64} {
  func.func @_linear_kernel(%arg0: i32, %arg1: i32, %arg2: i32, %arg3: memref<32x32xbf16, #tpu.memory_space<vmem>>, %arg4: memref<32x96xbf16, #tpu.memory_space<vmem>>, %arg5: memref<1x96xf32, #tpu.memory_space<vmem>>, %arg6: memref<32x96xf32, #tpu.memory_space<vmem>>, %arg7: memref<32x96xf32, #tpu.memory_space<vmem>>) attributes {dimension_semantics = [#tpu.dimension_semantics<parallel>, #tpu.dimension_semantics<parallel>, #tpu.dimension_semantics<arbitrary>], iteration_bounds = array<i64: 1, 1, 1>, scalar_prefetch = 0 : i64, scratch_operands = 1 : i64, tpu.core_type = #tpu.core_type<tc>, window_params = [{transform_indices = @transform_0, window_bounds = array<i64: 32, 32>}, {transform_indices = @transform_1, window_bounds = array<i64: 32, 96>}, {transform_indices = @transform_2, window_bounds = array<i64: 1, 96>}, {transform_indices = @transform_3, window_bounds = array<i64: 32, 96>}]} {
    %c0_i32 = arith.constant 0 : i32
    %0 = arith.cmpi eq, %arg2, %c0_i32 : i32
    %1 = arith.extui %0 : i1 to i32
    %c0_i32_0 = arith.constant 0 : i32
    %2 = arith.cmpi ne, %1, %c0_i32_0 : i32
    scf.if %2 {
      %cst_10 = arith.constant 0.000000e+00 : f32
      %12 = vector.broadcast %cst_10 : f32 to vector<32x96xf32>
      %c0_11 = arith.constant 0 : index
      %c0_12 = arith.constant 0 : index
      %13 = vector.load %arg7[%c0_11, %c0_12] : memref<32x96xf32, #tpu.memory_space<vmem>>, vector<32x96xf32>
      tpu.vector_store %arg7[%c0_11, %c0_12], %12 {strides = array<i32>} : memref<32x96xf32, #tpu.memory_space<vmem>>, vector<32x96xf32>,
    } else {
    }
    %c0 = arith.constant 0 : index
    %c0_1 = arith.constant 0 : index
    %3 = vector.load %arg7[%c0, %c0_1] : memref<32x96xf32, #tpu.memory_space<vmem>>, vector<32x96xf32>
    %c0_2 = arith.constant 0 : index
    %c0_3 = arith.constant 0 : index
    %4 = vector.load %arg3[%c0_2, %c0_3] : memref<32x32xbf16, #tpu.memory_space<vmem>>, vector<32x32xbf16>
    %c0_4 = arith.constant 0 : index
    %c0_5 = arith.constant 0 : index
    %5 = vector.load %arg4[%c0_4, %c0_5] : memref<32x96xbf16, #tpu.memory_space<vmem>>, vector<32x96xbf16>
    %cst = arith.constant dense<0.000000e+00> : vector<32x96xf32>
    %6 = tpu.matmul %4, %5, %cst {dimension_numbers = #tpu.dot_dimension_numbers<[1], [0], [0], [1], [0, 0, 1, 1], [], []>} : vector<32x32xbf16>, vector<32x96xbf16>, vector<32x96xf32> -> vector<32x96xf32>
    %7 = arith.addf %3, %6 : vector<32x96xf32>
    %c0_6 = arith.constant 0 : index
    %c0_7 = arith.constant 0 : index
    %8 = vector.load %arg7[%c0_6, %c0_7] : memref<32x96xf32, #tpu.memory_space<vmem>>, vector<32x96xf32>
    tpu.vector_store %arg7[%c0_6, %c0_7], %7 {strides = array<i32>} : memref<32x96xf32, #tpu.memory_space<vmem>>, vector<32x96xf32>,
    %c0_i32_8 = arith.constant 0 : i32
    %9 = arith.cmpi eq, %arg2, %c0_i32_8 : i32
    %10 = arith.extui %9 : i1 to i32
    %c0_i32_9 = arith.constant 0 : i32
    %11 = arith.cmpi ne, %10, %c0_i32_9 : i32
    scf.if %11 {
      %c0_10 = arith.constant 0 : index
      %c0_11 = arith.constant 0 : index
      %12 = vector.load %arg7[%c0_10, %c0_11] : memref<32x96xf32, #tpu.memory_space<vmem>>, vector<32x96xf32>
      %c0_12 = arith.constant 0 : index
      %c0_13 = arith.constant 0 : index
      %13 = vector.load %arg5[%c0_12, %c0_13] : memref<1x96xf32, #tpu.memory_space<vmem>>, vector<1x96xf32>
      %14 = vector.broadcast %13 : vector<1x96xf32> to vector<32x96xf32>
      %15 = arith.addf %12, %14 : vector<32x96xf32>
      %c0_14 = arith.constant 0 : index
      %c0_15 = arith.constant 0 : index
      %16 = vector.load %arg6[%c0_14, %c0_15] : memref<32x96xf32, #tpu.memory_space<vmem>>, vector<32x96xf32>
      tpu.vector_store %arg6[%c0_14, %c0_15], %15 {strides = array<i32>} : memref<32x96xf32, #tpu.memory_space<vmem>>, vector<32x96xf32>,
    } else {
    }
    return
  }
  func.func @transform_0(%arg0: i32, %arg1: i32, %arg2: i32) -> (i32, i32) {
    %c0_i32 = arith.constant 0 : i32
    return %arg0, %arg2 : i32, i32
  }
  func.func @transform_1(%arg0: i32, %arg1: i32, %arg2: i32) -> (i32, i32) {
    %c0_i32 = arith.constant 0 : i32
    return %arg2, %arg1 : i32, i32
  }
  func.func @transform_2(%arg0: i32, %arg1: i32, %arg2: i32) -> (i32, i32) {
    %c0_i32 = arith.constant 0 : i32
    %c0_i32_0 = arith.constant 0 : i32
    return %c0_i32, %arg1 : i32, i32
  }
  func.func @transform_3(%arg0: i32, %arg1: i32, %arg2: i32) -> (i32, i32) {
    %c0_i32 = arith.constant 0 : i32
    return %arg0, %arg1 : i32, i32
  }
}

</mosaic_0001>

<bundles_post_ra>
// kernel: tpu_custom_call.1
= control target key start
LH: loop header
LB: loop body
LE: loop exit
PB: predicated region body
PF: predicated region fallthrough
CT: control target
= control target key end

     0   :  { %8 = vsyncpa [#allocation4], 0  ;;  %s328_s0 = inlined_call_operand.hbm [shape: bf16[32,32], index: 0, kind: input, shape index: {}]   ;;  %s329_s1 = inlined_call_operand.hbm [shape: bf16[32,96], index: 1, kind: input, shape index: {}]   ;;  %s330_s2 = inlined_call_operand.vmem [shape: f32[1,96], index: 2, kind: input, shape index: {}]   ;;  %s331_s3 = inlined_call_operand.hbm [shape: f32[32,96], index: 3, kind: output, shape index: {}]  }
   0x1   :  { %9 = vsyncpa [#allocation7], 0 }
   0x2   :  { %10 = vsyncpa [#allocation5], 0  ;;  %s15_s14 = sshll.u32 %s328_s0, 4  ;;  %s276_s15 = smov [#allocation3]   ;;  %s16_s14 = int_to_ptr.hbm [resolvable:$true] %s15_s14 }
   0x3   :  { %s17_s16 = sshll.u32 %s276_s15, 4  ;;  %s28_s19 = sshll.u32 %s329_s1, 4  ;;  %s18_s16 = int_to_ptr.vmem [resolvable:$true] %s17_s16  ;;  %s29_s19 = int_to_ptr.hbm [resolvable:$true] %s28_s19 }
   0x4   :  { %s277_s20 = smov 64   ;;  %s278_s21 = smov 4  }
   0x5   :  { %23 = dma.hbm_to_vmem [thread:$0]  %s16_s14, 256, %s18_s16, [#allocation4], %s277_s20, %s277_s20, %s278_s21  }
   0x6   :  { %s279_s22 = smov [#allocation6]  }
   0x7   :  { %s30_s23 = sshll.u32 %s279_s22, 4  ;;  %s31_s23 = int_to_ptr.vmem [resolvable:$true] %s30_s23 }
   0x8   :  { %36 = dma.hbm_to_vmem [thread:$0]  %s29_s19, 256, %s31_s23, [#allocation7], %s277_s20, %s277_s20, %s278_s21  }
   0x9   :  { %270 = dma.done.wait [#allocation4], 256  }
   0xa   :  { %271 = vsyncadd [#allocation4], 4294967040 }
   0xb   :  { %272 = dma.done.wait [#allocation7], 256  }
   0xc   :  { %273 = vsyncadd [#allocation7], 4294967040  ;;  %vm52_vm0 = vcmask 785408   ;;  %v280_v0 = vmov 0.0   ;;  %v186_v1 = vld [vmem:[#allocation6 + $0x8] sm:$0xff]  ;;  %v185_v2 = vld [vmem:[#allocation6] sm:$0xff] }
   0xd   :  { %53 = vst.msk [vmem:[#allocation2] sm:$0xff] %vm52_vm0, %v280_v0  ;;  %104 = vmatpush.bf16.msra.mxu0 %v186_v1  ;;  %187 = vmatpush.bf16.msra.mxu1 %v186_v1  ;;  %v183_v3 = vld [vmem:[#allocation3] sm:$0xff]  ;;  %v184_v4 = vld [vmem:[#allocation3 + $0x8] sm:$0xff]  ;;  %vm91_vm1 = vcmask 261120   ;;  %s281_s24 = smov [#allocation8]   ;;  %s151_s27 = sshll.u32 %s331_s3, 4  ;;  %s152_s27 = int_to_ptr.hbm [resolvable:$true] %s151_s27 }
   0xe   :  { %54 = vst.msk [vmem:[#allocation2 + $0x8] sm:$0xff] %vm52_vm0, %v280_v0  ;;  %v197_v13 = vld [vmem:[%s330_s2] ss:$0 sm:$0xff]  ;;  %s149_s25 = sshll.u32 %s281_s24, 4  ;;  %s282_s28 = smov 128   ;;  %s150_s25 = int_to_ptr.vmem [resolvable:$true] %s149_s25 }
   0xf   :  { %55 = vst.msk [vmem:[#allocation2 + $0x10] sm:$0xff] %vm52_vm0, %v280_v0  ;;  %s283_s29 = smov 8  }
  0x10   :  { %56 = vst.msk [vmem:[#allocation2 + $0x18] sm:$0xff] %vm52_vm0, %v280_v0 }
  0x11   :  { %105 = vmatpush.bf16.msra.mxu0 %v185_v2  ;;  %188 = vmatpush.bf16.msra.mxu1 %v185_v2 }
  0x14   :  { %181 = vmatmul.msk.bf16.vlgmr.msra.gmra.mxu0 %vm91_vm1, %v183_v3  ;;  %182 = vmatmul.msk.bf16.vlgmr.msra.gmra.mxu1 %vm91_vm1, %v184_v4  ;;  %v57_v5 = vld [vmem:[#allocation2] sm:$0xff] }
  0x15   :  { %v58_v11 = vld [vmem:[#allocation2 + $0x8] sm:$0xff] }
  0x16   :  { %v59_v6 = vld [vmem:[#allocation2 + $0x10] sm:$0xff] }
  0x17   :  { %v60_v12 = vld [vmem:[#allocation2 + $0x18] sm:$0xff] }
  0x91   :  { %v107_v7 = vpop.f32.mrf.mxu0  ;;  %v112_v8 = vpop.f32.mrf.mxu1 }
  0x92   :  { %v117_v9 = vadd.f32 %v107_v7, %v57_v5  ;;  %v119_v10 = vadd.f32 %v112_v8, %v59_v6 }
  0x94   :  { %122 = vst.msk [vmem:[#allocation2] sm:$0xff] %vm52_vm0, %v117_v9 }
  0x95   :  { %124 = vst.msk [vmem:[#allocation2 + $0x10] sm:$0xff] %vm52_vm0, %v119_v10 }
  0x99   :  { %v109_v14 = vpop.f32.mrf.mxu0  ;;  %v114_v15 = vpop.f32.mrf.mxu1 }
  0x9a   :  { %v118_v16 = vadd.f32 %v109_v14, %v58_v11  ;;  %v120_v17 = vadd.f32 %v114_v15, %v60_v12 }
  0x9b   :  { %v129_v18 = vld [vmem:[#allocation2] sm:$0xff] }
  0x9c   :  { %123 = vst.msk [vmem:[#allocation2 + $0x8] sm:$0xff] %vm52_vm0, %v118_v16  ;;  %v131_v19 = vld [vmem:[#allocation2 + $0x10] sm:$0xff]  ;;  %v137_v20 = vadd.f32 %v197_v13, %v129_v18 }
  0x9d   :  { %125 = vst.msk [vmem:[#allocation2 + $0x18] sm:$0xff] %vm52_vm0, %v120_v17  ;;  %v139_v21 = vadd.f32 %v197_v13, %v131_v19 }
  0x9e   :  { %141 = vst.msk [vmem:[#allocation8] sm:$0xff] %vm52_vm0, %v137_v20 }
  0x9f   :  { %143 = vst.msk [vmem:[#allocation8 + $0x10] sm:$0xff] %vm52_vm0, %v139_v21 }
  0xa3   :  { %v130_v22 = vld [vmem:[#allocation2 + $0x8] sm:$0xff] }
  0xa4   :  { %v132_v23 = vld [vmem:[#allocation2 + $0x18] sm:$0xff]  ;;  %v138_v24 = vadd.f32 %v197_v13, %v130_v22 }
  0xa5   :  { %v140_v25 = vadd.f32 %v197_v13, %v132_v23 }
  0xa6   :  { %142 = vst.msk [vmem:[#allocation8 + $0x8] sm:$0xff] %vm52_vm0, %v138_v24 }
  0xa7   :  { %144 = vst.msk [vmem:[#allocation8 + $0x18] sm:$0xff] %vm52_vm0, %v140_v25 }
  0xa8   :  { %157 = dma.vmem_to_hbm [thread:$0]  %s150_s25, 512, %s152_s27, [#allocation5], %s282_s28, %s282_s28, %s283_s29  }
  0xa9   :  { %274 = dma.done.wait [#allocation5], 512  }
  0xaa   :  { %275 = vsyncadd [#allocation5], 4294966784 }
  0xab   :  { %162 = vsyncpa [#allocation4], 1 }
  0xac   :  { %163 = vsyncpa [#allocation7], 1 }
  0xad   :  { %164 = vsyncpa [#allocation5], 1 }

</bundles_post_ra>
